<compile_context>
chip_gen: v6e
topology: v6e:2x2x1
jax: 0.10.0
libtpu: 0.0.40
codegen_flags: <defaults>
</compile_context>

<pallas_src>
import functools

import jax
import jax.numpy as jnp
from jax.experimental import pallas as pl
from jax.experimental.pallas import tpu as pltpu


# ----------------------------------------------------------------------------
# In-kernel helpers
# ----------------------------------------------------------------------------
def _ln(x, g, b, eps):
    mu = jnp.mean(x, axis=-1, keepdims=True)
    xc = x - mu
    var = jnp.mean(xc * xc, axis=-1, keepdims=True)
    return xc * jax.lax.rsqrt(var + eps) * g + b


# ----------------------------------------------------------------------------
# Fused transformer tower kernel: grid=(depth,), x carried in the resident
# output block, one layer's weights per grid step (double-buffered by Pallas).
# ----------------------------------------------------------------------------
def _tower_layer_kernel(x_in_ref, ln1g_ref, ln1b_ref, qkvw_ref,
                        outw_ref, outb_ref, ln2g_ref, ln2b_ref,
                        ff1w_ref, ff1b_ref, ff2w_ref, ff2b_ref,
                        o_ref, *, batch, n_tokens, heads, dim_head, eps):
    @pl.when(pl.program_id(0) == 0)
    def _():
        o_ref[...] = x_in_ref[...]

    x = o_ref[...]                       # (batch*n_tokens, dim), f32
    inner = heads * dim_head
    scale = dim_head ** (-0.5)

    # --- PreNorm + Attention -------------------------------------------------
    xl = _ln(x, ln1g_ref[...], ln1b_ref[...], eps)
    qkv = jnp.dot(xl.astype(jnp.bfloat16), qkvw_ref[...],
                  preferred_element_type=jnp.float32)     # (B*N, 3*inner)

    batch_out = []
    for b in range(batch):
        r0 = b * n_tokens
        per_head = []
        for h in range(heads):
            c0 = h * dim_head
            q = qkv[r0:r0 + n_tokens, c0:c0 + dim_head]
            k = qkv[r0:r0 + n_tokens, inner + c0:inner + c0 + dim_head]
            v = qkv[r0:r0 + n_tokens, 2 * inner + c0:2 * inner + c0 + dim_head]
            s = jax.lax.dot_general(q, k, (((1,), (1,)), ((), ())),
                                    preferred_element_type=jnp.float32) * scale
            m = jnp.max(s, axis=-1, keepdims=True)
            p = jnp.exp(s - m)
            attn = p / jnp.sum(p, axis=-1, keepdims=True)
            per_head.append(jnp.dot(attn, v, preferred_element_type=jnp.float32))
        batch_out.append(jnp.concatenate(per_head, axis=-1))   # (N, inner)
    att = jnp.concatenate(batch_out, axis=0)                   # (B*N, inner)

    att = jnp.dot(att.astype(jnp.bfloat16), outw_ref[...],
                  preferred_element_type=jnp.float32) + outb_ref[...]
    x = x + att

    # --- PreNorm + FeedForward ----------------------------------------------
    xl = _ln(x, ln2g_ref[...], ln2b_ref[...], eps)
    hdn = jnp.dot(xl.astype(jnp.bfloat16), ff1w_ref[...],
                  preferred_element_type=jnp.float32) + ff1b_ref[...]
    # TODO(synk): torch nn.GELU uses exact erf; tanh-approx GELU used here
    # (guaranteed Mosaic lowering), max abs deviation ~1e-3.
    hdn = jax.nn.gelu(hdn, approximate=True)
    y = jnp.dot(hdn.astype(jnp.bfloat16), ff2w_ref[...],
                preferred_element_type=jnp.float32) + ff2b_ref[...]

    o_ref[...] = x + y


def transformer_tower(x, stack, *, batch, n_tokens, heads, dim_head):
    """x: (batch*n_tokens, dim) f32; stack: depth-stacked layer weights."""
    rows, dim = x.shape
    depth = stack["qkv_w"].shape[0]
    inner = heads * dim_head
    mlp_dim = stack["ff1_w"].shape[2]

    def wspec(r, c):
        return pl.BlockSpec((None, r, c), lambda l: (l, 0, 0))

    act_spec = pl.BlockSpec((rows, dim), lambda l: (0, 0))

    return pl.pallas_call(
        functools.partial(_tower_layer_kernel, batch=batch, n_tokens=n_tokens,
                          heads=heads, dim_head=dim_head, eps=1e-5),
        grid=(depth,),
        out_shape=jax.ShapeDtypeStruct((rows, dim), jnp.float32),
        in_specs=[
            act_spec,                                    # x_in (resident)
            wspec(1, dim), wspec(1, dim),                # ln1 gamma/beta
            wspec(dim, 3 * inner),                       # qkv_w (no bias)
            wspec(inner, dim), wspec(1, dim),            # out_w, out_b
            wspec(1, dim), wspec(1, dim),                # ln2 gamma/beta
            wspec(dim, mlp_dim), wspec(1, mlp_dim),      # ff1_w, ff1_b
            wspec(mlp_dim, dim), wspec(1, dim),          # ff2_w, ff2_b
        ],
        out_specs=act_spec,
        compiler_params=pltpu.CompilerParams(
            dimension_semantics=("arbitrary",)),
    )(x, stack["ln1_g"], stack["ln1_b"], stack["qkv_w"],
      stack["out_w"], stack["out_b"], stack["ln2_g"], stack["ln2_b"],
      stack["ff1_w"], stack["ff1_b"], stack["ff2_w"], stack["ff2_b"])


# ----------------------------------------------------------------------------
# Small single-shot kernels: patch embedding, fused decision head
# ----------------------------------------------------------------------------
def _linear_kernel(x_ref, w_ref, b_ref, o_ref):
    y = jnp.dot(x_ref[...].astype(w_ref.dtype), w_ref[...],
                preferred_element_type=jnp.float32) + b_ref[...]
    o_ref[...] = y.astype(o_ref.dtype)


def linear(x, w, b):
    M, _ = x.shape
    N = w.shape[1]
    return pl.pallas_call(
        _linear_kernel,
        out_shape=jax.ShapeDtypeStruct((M, N), jnp.float32),
    )(x, w, b.reshape(1, N))


def _head_kernel(x_ref, g_ref, bt_ref, w1_ref, b1_ref, w2_ref, b2_ref, m_ref,
                 o_ref, *, use_ln, eps):
    """Fused decision head: [LayerNorm] -> fc1 -> ReLU -> fc2 -> * mask."""
    x = x_ref[...]
    if use_ln:
        x = _ln(x, g_ref[...], bt_ref[...], eps)
    h = jnp.dot(x.astype(w1_ref.dtype), w1_ref[...],
                preferred_element_type=jnp.float32) + b1_ref[...]
    h = jnp.maximum(h, 0.0)
    y = jnp.dot(h.astype(w2_ref.dtype), w2_ref[...],
                preferred_element_type=jnp.float32) + b2_ref[...]
    o_ref[...] = (y * m_ref[...]).astype(o_ref.dtype)


def decision_head(x, hp, mask, use_ln):
    B, D = x.shape
    N = hp["w2"].shape[1]
    g = hp.get("ln_g", jnp.ones((1, D), jnp.float32))
    bt = hp.get("ln_b", jnp.zeros((1, D), jnp.float32))
    return pl.pallas_call(
        functools.partial(_head_kernel, use_ln=use_ln, eps=1e-5),
        out_shape=jax.ShapeDtypeStruct((B, N), jnp.float32),
    )(x, g, bt, hp["w1"], hp["b1"].reshape(1, -1), hp["w2"],
      hp["b2"].reshape(1, -1), mask)


# ----------------------------------------------------------------------------
# ViT forward (glue reshapes + Pallas compute)
# ----------------------------------------------------------------------------
def vit_forward(p, img, *, heads, dim_head, patch_size):
    B, C, H, W = img.shape
    p1, p2 = patch_size
    h, w = H // p1, W // p2
    # einops: 'b c (h p1) (w p2) -> b (h w) (p1 p2 c)'
    x = img.reshape(B, C, h, p1, w, p2).transpose(0, 2, 4, 3, 5, 1)
    x = x.reshape(B, h * w, p1 * p2 * C)
    n = h * w
    dim = p["patch_w"].shape[1]

    x = linear(x.reshape(B * n, -1), p["patch_w"], p["patch_b"]).reshape(B, n, dim)
    cls = jnp.broadcast_to(p["cls_token"], (B, 1, dim))
    x = jnp.concatenate([cls, x], axis=1)             # (B, n+1, dim)
    x = x + p["pos_embedding"][:, :n + 1]
    N = n + 1
    # emb_dropout = 0, transformer dropouts identity (eval mode)

    x = transformer_tower(x.reshape(B * N, dim), p["stack"],
                          batch=B, n_tokens=N, heads=heads, dim_head=dim_head)
    return x.reshape(B, N, dim)[:, 0]                 # pool == 'cls'


# ----------------------------------------------------------------------------
# myModel forward
# ----------------------------------------------------------------------------
def my_model_forward(params, card_feats, extra_feats, decide_which, mask):
    assert decide_which in ("play", "chi_gang", "action")
    num_cards = params["num_cards"]
    # card_feats (B, 14, num_cards) -> NCHW (B, 1, 14, num_cards)
    card_img = card_feats[:, None, :, :].astype(jnp.float32)
    card_layer = vit_forward(params["cards_net"], card_img,
                             heads=4, dim_head=64, patch_size=(1, num_cards))
    # extra_feats (B, E) -> NCHW (B, 1, E, 1)
    extra_img = extra_feats[:, None, :, None].astype(jnp.float32)
    extra_layer = vit_forward(params["extra_net"], extra_img,
                              heads=3, dim_head=64, patch_size=(4, 1))
    # TODO(synk): on v7x the two towers could run concurrently on the 2 TCs
    # (core_map / core-parallel grid); not done here to keep one code path.
    lin = jnp.concatenate([card_layer, extra_layer], axis=1)   # (B, 1024)
    mask = mask.astype(jnp.float32)
    if decide_which == "play":
        return decision_head(lin, params["play_head"], mask, use_ln=True)
    elif decide_which == "action":
        return decision_head(lin, params["action_head"], mask, use_ln=False)
    else:
        return decision_head(lin, params["chi_head"], mask, use_ln=False)


# ----------------------------------------------------------------------------
# Deterministic parameter init (shapes as in myModel.__init__); matmul weights
# stored in bf16 (streamed halved HBM bytes), LN params / biases in f32.
# ----------------------------------------------------------------------------
def _nrm(key, shape, scale=0.02, dtype=jnp.bfloat16):
    return (scale * jax.random.normal(key, shape, jnp.float32)).astype(dtype)


def init_vit(key, *, patch_dim, num_patches, dim, depth, heads, dim_head, mlp_dim):
    inner = heads * dim_head
    keys = jax.random.split(key, 7)
    return {
        "patch_w": _nrm(keys[0], (patch_dim, dim)),
        "patch_b": jnp.zeros((dim,), jnp.float32),
        "pos_embedding": _nrm(keys[1], (1, num_patches + 1, dim), 1.0, jnp.float32),
        "cls_token": _nrm(keys[2], (1, 1, dim), 1.0, jnp.float32),
        "stack": {
            "ln1_g": jnp.ones((depth, 1, dim), jnp.float32),
            "ln1_b": jnp.zeros((depth, 1, dim), jnp.float32),
            "qkv_w": _nrm(keys[3], (depth, dim, 3 * inner)),   # to_qkv, no bias
            "out_w": _nrm(keys[4], (depth, inner, dim)),
            "out_b": jnp.zeros((depth, 1, dim), jnp.float32),
            "ln2_g": jnp.ones((depth, 1, dim), jnp.float32),
            "ln2_b": jnp.zeros((depth, 1, dim), jnp.float32),
            "ff1_w": _nrm(keys[5], (depth, dim, mlp_dim)),
            "ff1_b": jnp.zeros((depth, 1, mlp_dim), jnp.float32),
            "ff2_w": _nrm(keys[6], (depth, mlp_dim, dim)),
            "ff2_b": jnp.zeros((depth, 1, dim), jnp.float32),
        },
    }


def init_head(key, in_dim, fc_dim, out_dim, with_ln):
    k1, k2 = jax.random.split(key)
    hp = {
        "w1": _nrm(k1, (in_dim, fc_dim)),
        "b1": jnp.zeros((fc_dim,), jnp.float32),
        "w2": _nrm(k2, (fc_dim, out_dim)),
        "b2": jnp.zeros((out_dim,), jnp.float32),
    }
    if with_ln:
        hp["ln_g"] = jnp.ones((1, in_dim), jnp.float32)
        hp["ln_b"] = jnp.zeros((1, in_dim), jnp.float32)
    return hp


def init_my_model(key, num_extra_feats, num_cards, num_actions):
    dim, mlp_dim, fc_dim = 512, 1024, 2048
    k1, k2, k3, k4, k5 = jax.random.split(key, 5)
    return {
        "num_cards": num_cards,
        "cards_net": init_vit(k1, patch_dim=num_cards, num_patches=14, dim=dim,
                              depth=6, heads=4, dim_head=64, mlp_dim=mlp_dim),
        "extra_net": init_vit(k2, patch_dim=4, num_patches=num_extra_feats // 4,
                              dim=dim, depth=3, heads=3, dim_head=64,
                              mlp_dim=mlp_dim),
        "play_head": init_head(k3, mlp_dim, fc_dim, num_cards, with_ln=True),
        "chi_head": init_head(k4, mlp_dim, fc_dim, num_cards, with_ln=False),
        "action_head": init_head(k5, mlp_dim, fc_dim, num_actions, with_ln=False),
    }


# ----------------------------------------------------------------------------
if __name__ == "__main__":
    B = 2
    NUM_CARDS = 34          # mahjong-sized card vocabulary
    NUM_EXTRA = 8           # must be divisible by patch height 4
    NUM_ACTIONS = 8

    key = jax.random.PRNGKey(0)
    k_params, k_cards, k_extra = jax.random.split(key, 3)

    params = init_my_model(k_params, NUM_EXTRA, NUM_CARDS, NUM_ACTIONS)

    card_feats = jax.random.normal(k_cards, (B, 14, NUM_CARDS), jnp.float32)
    extra_feats = jax.random.normal(k_extra, (B, NUM_EXTRA), jnp.float32)
    mask_cards = jnp.ones((B, NUM_CARDS), jnp.float32).at[:, ::3].set(0.0)
    mask_actions = jnp.ones((B, NUM_ACTIONS), jnp.float32)

    out_play = my_model_forward(params, card_feats, extra_feats, "play", mask_cards)
    out_action = my_model_forward(params, card_feats, extra_feats, "action", mask_actions)
    out_chi = my_model_forward(params, card_feats, extra_feats, "chi_gang", mask_cards)
    jax.block_until_ready((out_play, out_action, out_chi))

    assert out_play.shape == (B, NUM_CARDS)
    assert out_action.shape == (B, NUM_ACTIONS)
    assert out_chi.shape == (B, NUM_CARDS)
    # masked positions must be exactly zero
    assert float(jnp.abs(out_play[:, ::3]).max()) == 0.0
    assert bool(jnp.all(jnp.isfinite(out_play)))

    print("KERNEL_OK")
</pallas_src>

<mosaic_0001>
module attributes {stable_mosaic.version = 11 : i64} {
  func.func @_linear_kernel(%arg0: memref<28x34xf32, #tpu.memory_space<vmem>>, %arg1: memref<34x512xbf16, #tpu.memory_space<vmem>>, %arg2: memref<1x512xf32, #tpu.memory_space<vmem>>, %arg3: memref<28x512xf32, #tpu.memory_space<vmem>>) attributes {dimension_semantics = [], scalar_prefetch = 0 : i64, scratch_operands = 0 : i64, tpu.core_type = #tpu.core_type<tc>} {
    %c0 = arith.constant 0 : index
    %c0_0 = arith.constant 0 : index
    %0 = vector.load %arg0[%c0, %c0_0] : memref<28x34xf32, #tpu.memory_space<vmem>>, vector<28x34xf32>
    %1 = arith.truncf %0 : vector<28x34xf32> to vector<28x34xbf16>
    %c0_1 = arith.constant 0 : index
    %c0_2 = arith.constant 0 : index
    %2 = vector.load %arg1[%c0_1, %c0_2] : memref<34x512xbf16, #tpu.memory_space<vmem>>, vector<34x512xbf16>
    %cst = arith.constant dense<0.000000e+00> : vector<28x512xf32>
    %3 = tpu.matmul %1, %2, %cst {dimension_numbers = #tpu.dot_dimension_numbers<[1], [0], [0], [1], [0, 0, 1, 1], [], []>} : vector<28x34xbf16>, vector<34x512xbf16>, vector<28x512xf32> -> vector<28x512xf32>
    %c0_3 = arith.constant 0 : index
    %c0_4 = arith.constant 0 : index
    %4 = vector.load %arg2[%c0_3, %c0_4] : memref<1x512xf32, #tpu.memory_space<vmem>>, vector<1x512xf32>
    %5 = vector.broadcast %4 : vector<1x512xf32> to vector<28x512xf32>
    %6 = arith.addf %3, %5 : vector<28x512xf32>
    %c0_5 = arith.constant 0 : index
    %c0_6 = arith.constant 0 : index
    %7 = vector.load %arg3[%c0_5, %c0_6] : memref<28x512xf32, #tpu.memory_space<vmem>>, vector<28x512xf32>
    tpu.vector_store %arg3[%c0_5, %c0_6], %6 {strides = array<i32>} : memref<28x512xf32, #tpu.memory_space<vmem>>, vector<28x512xf32>,
    return
  }
}

</mosaic_0001>

<bundles_post_ra>
// kernel: tpu_custom_call.1
= control target key start
LH: loop header
LB: loop body
LE: loop exit
PB: predicated region body
PF: predicated region fallthrough
CT: control target
= control target key end

     0   :  { %8 = vsyncpa [#allocation3], 0  ;;  %s477_s0 = inlined_call_operand.hbm [shape: f32[28,34], index: 0, kind: input, shape index: {}]   ;;  %s478_s1 = inlined_call_operand.hbm [shape: bf16[34,512], index: 1, kind: input, shape index: {}]   ;;  %s479_s2 = inlined_call_operand.hbm [shape: f32[1,512], index: 2, kind: input, shape index: {}]   ;;  %s480_s3 = inlined_call_operand.hbm [shape: f32[28,512], index: 3, kind: output, shape index: {}]  }
   0x1   :  { %9 = vsyncpa [#allocation6], 0 }
   0x2   :  { %10 = vsyncpa [#allocation4], 0  ;;  %s434_s12 = smov [#allocation5]  }
   0x3   :  { %s28_s13 = sshll.u32 %s434_s12, 4  ;;  %s29_s13 = int_to_ptr.vmem [resolvable:$true] %s28_s13 }
   0x4   :  { %s356_s14 = scalar_lea.vmem %s29_s13, 1280  ;;  %p361_p1 = scmp.lt.s32.totalorder %s29_s13, %s29_s13 }
   0x5   :  { %p357_p0 = scmp.ne.s32.totalorder %s29_s13, %s356_s14  ;;  %p362_p2 = scmp.lt.s32.totalorder %s356_s14, %s356_s14 }
   0x7   :  { %p363_p3 = por %p362_p2, %p361_p1 }
   0x9   :  { %p364_p4 = pnand %p363_p3, %p357_p0 }
   0xb   :  { %367 = shalt.err (!%p364_p4)
}
   0xc   :  { %s435_s15 = smov 256   ;;  %s436_s16 = smov 16  }
   0xd   :  { %34 = dma.hbm_to_vmem [thread:$0]  %s478_s1, 1280, %s29_s13, [#allocation6], %s435_s15, %s435_s15, %s436_s16  }
   0xe   :  { %s437_s19 = smov [#allocation2]  }
   0xf   :  { %s16_s20 = sshll.u32 %s437_s19, 4  ;;  %s17_s20 = int_to_ptr.vmem [resolvable:$true] %s16_s20 }
  0x10   :  { %s376_s21 = scalar_lea.vmem %s17_s20, 512  ;;  %p381_p6 = scmp.lt.s32.totalorder %s17_s20, %s17_s20 }
  0x11   :  { %p377_p5 = scmp.ne.s32.totalorder %s17_s20, %s376_s21  ;;  %p382_p7 = scmp.lt.s32.totalorder %s376_s21, %s376_s21 }
  0x13   :  { %p383_p8 = por %p382_p7, %p381_p6 }
  0x15   :  { %p384_p9 = pnand %p383_p8, %p377_p5 }
  0x17   :  { %387 = shalt.err (!%p384_p9)
}
  0x18   :  { %s438_s22 = smov 128   ;;  %s439_s23 = smov 8  }
  0x19   :  { %22 = dma.hbm_to_vmem [thread:$0]  %s477_s0, 512, %s17_s20, [#allocation3], %s438_s22, %s438_s22, %s439_s23  }
  0x1a   :  { %s440_s26 = smov [#allocation7]  }
  0x1b   :  { %s41_s27 = sshll.u32 %s440_s26, 4  ;;  %s42_s27 = int_to_ptr.vmem [resolvable:$true] %s41_s27 }
  0x1c   :  { %s396_s1 = scalar_lea.vmem %s42_s27, 64  ;;  %p401_p11 = scmp.lt.s32.totalorder %s42_s27, %s42_s27 }
  0x1d   :  { %p397_p10 = scmp.ne.s32.totalorder %s42_s27, %s396_s1  ;;  %p402_p12 = scmp.lt.s32.totalorder %s396_s1, %s396_s1 }
  0x1f   :  { %p403_p13 = por %p402_p12, %p401_p11 }
  0x21   :  { %p404_p0 = pnand %p403_p13, %p397_p10 }
  0x23   :  { %407 = shalt.err (!%p404_p0)
}
  0x24   :  { %44 = dma.hbm_to_vmem [thread:$0]  %s479_s2, 64, %s42_s27, [#allocation6]  }
  0x25   :  { %428 = dma.done.wait [#allocation3], 512  }
  0x26   :  { %429 = vsyncadd [#allocation3], 4294966784 }
  0x27   :  { %430 = dma.done.wait [#allocation6], 1344  }
  0x28   :  { %431 = vsyncadd [#allocation6], 4294965952  ;;  %v441_v0 = vmov 0   ;;  %v69_v1 = vld [vmem:[#allocation5 + $0x40] sm:$0x11]  ;;  %vm150_vm0 = vcmask 1040384   ;;  %v73_v23 = vlaneseq }
  0x29   :  { %195 = vmatprep.mubr.bf16.mxu0 %v441_v0  ;;  %248 = vmatprep.mubr.bf16.mxu1 %v441_v0  ;;  %v70_v2 = vld [vmem:[#allocation5 + $0x48] sm:$0x11]  ;;  %v312_v3 = vcombine.high %v69_v1, %v69_v1  ;;  %v311_v5 = vcombine.low %v69_v1, %v69_v1  ;;  %v336_v7 = vld [vmem:[#allocation5 + $0x24] ss:$16 sps:$4 sm:$0xff]   ;;  %v340_v11 = vld [vmem:[#allocation5 + $0x20] ss:$16 sps:$4 sm:$0xff]  }
  0x2a   :  { %v314_v4 = vcombine.high %v70_v2, %v70_v2  ;;  %v313_v6 = vcombine.low %v70_v2, %v70_v2  ;;  %v338_v8 = vld [vmem:[#allocation5 + $0x2c] ss:$16 sps:$4 sm:$0xff]   ;;  %v341_v12 = vld [vmem:[#allocation5 + $0x28] ss:$16 sps:$4 sm:$0xff]   ;;  %v342_v13 = vld [vmem:[#allocation5 + $0x4] ss:$16 sps:$4 sm:$0xff]  }
  0x2b   :  { %315 = vmatprep.subr.msk.bf16.mxu0 %vm150_vm0, %v312_v3  ;;  %v152_v9 = vsel %vm150_vm0, %v311_v5, 0  ;;  %v344_v14 = vld [vmem:[#allocation5 + $0xc] ss:$16 sps:$4 sm:$0xff]   ;;  %v346_v15 = vld [vmem:[#allocation5] ss:$16 sps:$4 sm:$0xff]   ;;  %vm143_vm1 = vcmask 277504  }
  0x2c   :  { %318 = vmatprep.subr.msk.bf16.mxu1 %vm150_vm0, %v314_v4  ;;  %v158_v10 = vsel %vm150_vm0, %v313_v6, 0  ;;  %174 = vmatpush1.bf16.msra.mxu0 %v152_v9  ;;  %v347_v16 = vld [vmem:[#allocation5 + $0x8] ss:$16 sps:$4 sm:$0xff]   ;;  %v55_v17 = vld [vmem:[#allocation2] sm:$0xff]  ;;  %v57_v20 = vld [vmem:[#allocation2 + $0x10] sm:$0xff]  ;;  %v74_v24 = vshrl.u32 %v73_v23, 7 }
  0x2d   :  { %227 = vmatpush1.bf16.msra.mxu1 %v158_v10  ;;  %175 = vmatprep.subr.bf16.mxu0 %v336_v7  ;;  %v56_v18 = vld [vmem:[#allocation2 + $0x8] sm:$0xff]  ;;  %v58_v21 = vld [vmem:[#allocation2 + $0x18] sm:$0xf]  ;;  %v71_v27 = vld [vmem:[#allocation7] sm:$0xf]  ;;  %s442_s0 = smov [#allocation8]  }
  0x2e   :  { %228 = vmatprep.subr.bf16.mxu1 %v338_v8  ;;  %v59_v19 = vpack.c.bf16 %v56_v18, %v55_v17  ;;  %v60_v22 = vpack.c.bf16 %v58_v21, %v57_v20  ;;  %v75_v25 = vsub.s32 0, %v74_v24  ;;  %v83_v26 = vsub.s32 2, %v74_v24  ;;  %s290_s2 = sshll.u32 %s442_s0, 4  ;;  %s291_s2 = int_to_ptr.vmem [resolvable:$true] %s290_s2 }
  0x2f   :  { %v79_v28 = vsub.s32 1, %v74_v24  ;;  %v87_v29 = vsub.s32 3, %v74_v24  ;;  %s408_s30 = scalar_lea.vmem %s291_s2, 2048  ;;  %p413_p2 = scmp.lt.s32.totalorder %s291_s2, %s291_s2 }
  0x30   :  { %176 = vmatpush1.bf16.msra.mxu0 %v340_v11  ;;  %v76_v30 = vrot.slane %v71_v27, %v75_v25  ;;  %v84_v31 = vrot.slane %v71_v27, %v83_v26  ;;  %p409_p1 = scmp.ne.s32.totalorder %s291_s2, %s408_s30  ;;  %p414_p3 = scmp.lt.s32.totalorder %s408_s30, %s408_s30 }
  0x31   :  { %229 = vmatpush1.bf16.msra.mxu1 %v341_v12  ;;  %177 = vmatprep.subr.bf16.mxu0 %v342_v13  ;;  %v80_v32 = vrot.slane %v71_v27, %v79_v28  ;;  %v88_v33 = vrot.slane %v71_v27, %v87_v29 }
  0x32   :  { %230 = vmatprep.subr.bf16.mxu1 %v344_v14  ;;  %p415_p4 = por %p414_p3, %p413_p2 }
  0x34   :  { %178 = vmatpush1.bf16.msra.mxu0 %v346_v15  ;;  %p416_p5 = pnand %p415_p4, %p409_p1 }
  0x35   :  { %231 = vmatpush1.bf16.msra.mxu1 %v347_v16 }
  0x37   :  { %316 = vmatmul.mubr.msk.bf16.vlgmr.msra.gmra.mxu0 %vm143_vm1, %v59_v19 }
  0x38   :  { %319 = vmatmul.mubr.msk.bf16.vlgmr.msra.gmra.mxu1 %vm143_vm1, %v59_v19  ;;  %205 = vmatprep.mubr.bf16.mxu0 %v441_v0 }
  0x39   :  { %258 = vmatprep.mubr.bf16.mxu1 %v441_v0 }
  0x3f   :  { %317 = vmatmul.mubr.msk.bf16.gmra.mxu0 %vm143_vm1, %v60_v22 }
  0x40   :  { %320 = vmatmul.mubr.msk.bf16.gmra.mxu1 %vm143_vm1, %v60_v22 }
  0xf7   :  { %v197_v34 = vpop.f32.mrf.mxu0 }
  0xf8   :  { %v250_v35 = vpop.f32.mrf.mxu1  ;;  %v198_v36 = vadd.f32 %v197_v34, %v76_v30 }
  0xf9   :  { %v251_v37 = vadd.f32 %v250_v35, %v84_v31  ;;  %v199_v38 = vpop.f32.mrf.mxu0 }
  0xfa   :  { %v252_v39 = vpop.f32.mrf.mxu1  ;;  %269 = vst [vmem:[#allocation8] sm:$0xff] %v198_v36  ;;  %v200_v40 = vadd.f32 %v199_v38, %v80_v32 }
  0xfb   :  { %271 = vst [vmem:[#allocation8 + $0x10] sm:$0xff] %v251_v37  ;;  %v253_v41 = vadd.f32 %v252_v39, %v88_v33  ;;  %v201_v42 = vpop.f32.mrf.mxu0 }
  0xfc   :  { %v254_v43 = vpop.f32.mrf.mxu1  ;;  %270 = vst [vmem:[#allocation8 + $0x8] sm:$0xff] %v200_v40  ;;  %v202_v44 = vadd.f32 %v201_v42, %v76_v30 }
  0xfd   :  { %272 = vst [vmem:[#allocation8 + $0x18] sm:$0xff] %v253_v41  ;;  %v255_v45 = vadd.f32 %v254_v43, %v84_v31  ;;  %v203_v46 = vpop.f32.mrf.mxu0 }
  0xfe   :  { %v256_v47 = vpop.f32.mrf.mxu1  ;;  %273 = vst [vmem:[#allocation8 + $0x20] sm:$0xff] %v202_v44  ;;  %v204_v48 = vadd.f32 %v203_v46, %v80_v32 }
  0xff   :  { %275 = vst [vmem:[#allocation8 + $0x30] sm:$0xff] %v255_v45  ;;  %v257_v49 = vadd.f32 %v256_v47, %v88_v33  ;;  %v207_v50 = vpop.f32.mrf.mxu0 }
 0x100   :  { %v260_v51 = vpop.f32.mrf.mxu1  ;;  %274 = vst [vmem:[#allocation8 + $0x28] sm:$0xff] %v204_v48  ;;  %v208_v52 = vadd.f32 %v207_v50, %v76_v30 }
 0x101   :  { %276 = vst [vmem:[#allocation8 + $0x38] sm:$0xff] %v257_v49  ;;  %v261_v53 = vadd.f32 %v260_v51, %v84_v31  ;;  %v209_v54 = vpop.f32.mrf.mxu0 }
 0x102   :  { %v262_v55 = vpop.f32.mrf.mxu1  ;;  %277 = vst [vmem:[#allocation8 + $0x40] sm:$0xff] %v208_v52  ;;  %v210_v56 = vadd.f32 %v209_v54, %v80_v32 }
 0x103   :  { %279 = vst [vmem:[#allocation8 + $0x50] sm:$0xff] %v261_v53  ;;  %v263_v57 = vadd.f32 %v262_v55, %v88_v33  ;;  %v211_v58 = vpop.f32.mrf.mxu0 }
 0x104   :  { %v264_v59 = vpop.f32.mrf.mxu1  ;;  %278 = vst [vmem:[#allocation8 + $0x48] sm:$0xff] %v210_v56  ;;  %v212_v60 = vadd.f32 %v211_v58, %v76_v30 }
 0x105   :  { %280 = vst [vmem:[#allocation8 + $0x58] sm:$0xff] %v263_v57  ;;  %v265_v61 = vadd.f32 %v264_v59, %v84_v31  ;;  %v213_v62 = vpop.f32.mrf.mxu0 }
 0x106   :  { %v266_v63 = vpop.f32.mrf.mxu1  ;;  %281 = vst [vmem:[#allocation8 + $0x60] sm:$0xf] %v212_v60  ;;  %v214_v0 = vadd.f32 %v213_v62, %v80_v32 }
 0x107   :  { %283 = vst [vmem:[#allocation8 + $0x70] sm:$0xf] %v265_v61  ;;  %v267_v1 = vadd.f32 %v266_v63, %v88_v33 }
 0x108   :  { %282 = vst [vmem:[#allocation8 + $0x68] sm:$0xf] %v214_v0 }
 0x109   :  { %284 = vst [vmem:[#allocation8 + $0x78] sm:$0xf] %v267_v1 }
 0x10a   :  { %419 = shalt.err (!%p416_p5)
}
 0x10b   :  { %s443_s4 = smov 512   ;;  %s444_s5 = smov 32  }
 0x10c   :  { %296 = dma.vmem_to_hbm [thread:$0]  %s291_s2, 2048, %s480_s3, [#allocation4], %s443_s4, %s443_s4, %s444_s5  }
 0x10d   :  { %432 = dma.done.wait [#allocation4], 2048  }
 0x10e   :  { %433 = vsyncadd [#allocation4], 4294965248 }
 0x10f   :  { %300 = vsyncpa [#allocation3], 1 }
 0x110   :  { %301 = vsyncpa [#allocation6], 1 }
 0x111   :  { %302 = vsyncpa [#allocation4], 1 }

</bundles_post_ra>
